<compile_context>
chip_gen: v6e
topology: v6e:2x2x1
jax: 0.10.0
libtpu: 0.0.40
codegen_flags: <defaults>
</compile_context>

<pallas_src>
import math
from functools import reduce

import jax
import jax.numpy as jnp
from jax.experimental import pallas as pl
from jax.experimental.pallas import tpu as pltpu


def _make_rsoftmax_kernel(radix: int, cardinality: int, rest: int):
    """Softmax over the radix axis with the output transpose fused in.

    Input rows are flat [cardinality][radix][rest]; output rows are flat
    [radix][cardinality][rest] (== torch .transpose(1,2).reshape(B, -1)).
    All slice offsets are static Python ints, so the loops fully unroll.
    """

    def kernel(x_ref, o_ref):
        x = x_ref[...].astype(jnp.float32)          # (TB, total), one dense load
        out_chunks = [None] * (radix * cardinality)
        for c in range(cardinality):
            xs = [
                x[:, (c * radix + r) * rest:(c * radix + r + 1) * rest]
                for r in range(radix)
            ]
            m = reduce(jnp.maximum, xs)              # max over radix
            es = [jnp.exp(v - m) for v in xs]
            s = reduce(jnp.add, es)                  # sum over radix
            inv = pl.reciprocal(s, approx=True)      # EUP vrcp (free slot)
            for r in range(radix):
                out_chunks[r * cardinality + c] = es[r] * inv
        # Single lane-dense store of the transposed row.
        o_ref[...] = jnp.concatenate(out_chunks, axis=-1).astype(o_ref.dtype)

    return kernel


def _sigmoid_kernel(x_ref, o_ref):
    x = x_ref[...].astype(jnp.float32)
    o_ref[...] = pl.reciprocal(1.0 + jnp.exp(-x), approx=True).astype(o_ref.dtype)


def _row_tile(batch: int, row_bytes: int, budget_bytes: int = 8 * 1024 * 1024) -> int:
    """Rows per block: whole batch if it fits, else a multiple of 8 rows."""
    # ~4x row_bytes resident: in + out, each double-buffered.
    rows = max(1, budget_bytes // max(4 * row_bytes, 1))
    if rows >= batch:
        return batch
    return min(batch, max(8, (rows // 8) * 8))


def rsoftmax(x, radix: int, cardinality: int):
    """Pallas implementation of rSoftMax.forward for NCHW input (B, C, H, W)."""
    batch = x.shape[0]
    total = math.prod(x.shape[1:])

    if radix > 1:
        assert total % (radix * cardinality) == 0, (
            f"C*H*W={total} must be divisible by radix*cardinality="
            f"{radix * cardinality}"
        )
        rest = total // (radix * cardinality)
        xf = x.reshape(batch, total)                 # contiguous -> free
        tb = _row_tile(batch, total * xf.dtype.itemsize)
        kernel = _make_rsoftmax_kernel(radix, cardinality, rest)
        out = pl.pallas_call(
            kernel,
            out_shape=jax.ShapeDtypeStruct((batch, total), x.dtype),
            grid_spec=pltpu.PrefetchScalarGridSpec(
                num_scalar_prefetch=0,
                grid=(pl.cdiv(batch, tb),),
                in_specs=[pl.BlockSpec((tb, total), lambda b: (b, 0))],
                out_specs=pl.BlockSpec((tb, total), lambda b: (b, 0)),
            ),
            compiler_params=pltpu.CompilerParams(
                dimension_semantics=("parallel",)
            ),
        )(xf)
        return out                                   # == reshape(batch, -1)
    else:
        xf = x.reshape(batch, total)
        tr = batch if batch <= 256 else 256          # multiple of 8 or full
        tc = total if total <= 4096 else 4096        # multiple of 128 or full
        out = pl.pallas_call(
            _sigmoid_kernel,
            out_shape=jax.ShapeDtypeStruct((batch, total), x.dtype),
            grid_spec=pltpu.PrefetchScalarGridSpec(
                num_scalar_prefetch=0,
                grid=(pl.cdiv(batch, tr), pl.cdiv(total, tc)),
                in_specs=[pl.BlockSpec((tr, tc), lambda i, j: (i, j))],
                out_specs=pl.BlockSpec((tr, tc), lambda i, j: (i, j)),
            ),
            compiler_params=pltpu.CompilerParams(
                dimension_semantics=("parallel", "parallel")
            ),
        )(xf)
        return out.reshape(x.shape)                  # torch.sigmoid keeps shape


def _rsoftmax_ref(x, radix, cardinality):
    batch = x.shape[0]
    if radix > 1:
        total = math.prod(x.shape[1:])
        rest = total // (cardinality * radix)
        xr = x.reshape(batch, cardinality, radix, rest).transpose(0, 2, 1, 3)
        return jax.nn.softmax(xr, axis=1).reshape(batch, -1)
    return jax.nn.sigmoid(x)


if __name__ == "__main__":
    key = jax.random.PRNGKey(0)
    k1, k2, k3 = jax.random.split(key, 3)

    # Case 1: typical SplAtConv2d attention input, lane-dense rows (total=256).
    radix, cardinality, inner = 2, 2, 64
    B = 16
    C = radix * cardinality * inner                  # 256
    x = jax.random.normal(k1, (B, C, 1, 1), dtype=jnp.float32)
    out = jax.block_until_ready(rsoftmax(x, radix, cardinality))
    ref = _rsoftmax_ref(x, radix, cardinality)
    assert out.shape == (B, C), out.shape
    assert jnp.allclose(out, ref, atol=2e-3, rtol=2e-3)

    # Case 2: small / non-128-aligned chunks (original repro shape).
    radix2, card2, inner2 = 2, 2, 8
    C2 = radix2 * card2 * inner2                     # 32
    x2 = jax.random.normal(k2, (2, C2, 1, 1), dtype=jnp.float32)
    out2 = jax.block_until_ready(rsoftmax(x2, radix2, card2))
    ref2 = _rsoftmax_ref(x2, radix2, card2)
    assert out2.shape == (2, C2), out2.shape
    assert jnp.allclose(out2, ref2, atol=2e-3, rtol=2e-3)

    # Case 3: radix == 1 -> sigmoid, keeps the original NCHW shape.
    x3 = jax.random.normal(k3, (4, 8, 16, 16), dtype=jnp.float32)
    out3 = jax.block_until_ready(rsoftmax(x3, 1, 1))
    ref3 = _rsoftmax_ref(x3, 1, 1)
    assert out3.shape == x3.shape, out3.shape
    assert jnp.allclose(out3, ref3, atol=2e-3, rtol=2e-3)

    print("KERNEL_OK")
</pallas_src>

<mosaic_0001>
module attributes {stable_mosaic.version = 11 : i64} {
  func.func @kernel(%arg0: i32, %arg1: memref<16x256xf32, #tpu.memory_space<vmem>>, %arg2: memref<16x256xf32, #tpu.memory_space<vmem>>) attributes {dimension_semantics = [#tpu.dimension_semantics<parallel>], iteration_bounds = array<i64: 1>, scalar_prefetch = 0 : i64, scratch_operands = 0 : i64, tpu.core_type = #tpu.core_type<tc>, window_params = [{transform_indices = @transform_0, window_bounds = array<i64: 16, 256>}, {transform_indices = @transform_1, window_bounds = array<i64: 16, 256>}]} {
    %c0 = arith.constant 0 : index
    %c0_0 = arith.constant 0 : index
    %0 = vector.load %arg1[%c0, %c0_0] : memref<16x256xf32, #tpu.memory_space<vmem>>, vector<16x256xf32>
    %1 = vector.extract_strided_slice %0 {offsets = [0, 0], sizes = [16, 64], strides = [1, 1]} : vector<16x256xf32> to vector<16x64xf32>
    %2 = vector.extract_strided_slice %0 {offsets = [0, 64], sizes = [16, 64], strides = [1, 1]} : vector<16x256xf32> to vector<16x64xf32>
    %3 = arith.maximumf %1, %2 : vector<16x64xf32>
    %4 = arith.subf %1, %3 : vector<16x64xf32>
    %5 = math.exp %4 : vector<16x64xf32>
    %6 = arith.subf %2, %3 : vector<16x64xf32>
    %7 = math.exp %6 : vector<16x64xf32>
    %8 = arith.addf %5, %7 : vector<16x64xf32>
    %9 = tpu.reciprocal %8 {approx = true} : vector<16x64xf32> -> vector<16x64xf32>
    %10 = arith.mulf %5, %9 : vector<16x64xf32>
    %11 = arith.mulf %7, %9 : vector<16x64xf32>
    %12 = vector.extract_strided_slice %0 {offsets = [0, 128], sizes = [16, 64], strides = [1, 1]} : vector<16x256xf32> to vector<16x64xf32>
    %13 = vector.extract_strided_slice %0 {offsets = [0, 192], sizes = [16, 64], strides = [1, 1]} : vector<16x256xf32> to vector<16x64xf32>
    %14 = arith.maximumf %12, %13 : vector<16x64xf32>
    %15 = arith.subf %12, %14 : vector<16x64xf32>
    %16 = math.exp %15 : vector<16x64xf32>
    %17 = arith.subf %13, %14 : vector<16x64xf32>
    %18 = math.exp %17 : vector<16x64xf32>
    %19 = arith.addf %16, %18 : vector<16x64xf32>
    %20 = tpu.reciprocal %19 {approx = true} : vector<16x64xf32> -> vector<16x64xf32>
    %21 = arith.mulf %16, %20 : vector<16x64xf32>
    %22 = arith.mulf %18, %20 : vector<16x64xf32>
    %23 = tpu.concatenate %10, %21, %11, %22 in 1 : vector<16x64xf32>, vector<16x64xf32>, vector<16x64xf32>, vector<16x64xf32> -> vector<16x256xf32>
    %c0_1 = arith.constant 0 : index
    %c0_2 = arith.constant 0 : index
    %24 = vector.load %arg2[%c0_1, %c0_2] : memref<16x256xf32, #tpu.memory_space<vmem>>, vector<16x256xf32>
    tpu.vector_store %arg2[%c0_1, %c0_2], %23 {strides = array<i32>} : memref<16x256xf32, #tpu.memory_space<vmem>>, vector<16x256xf32>,
    return
  }
  func.func @transform_0(%arg0: i32) -> (i32, i32) {
    %c0_i32 = arith.constant 0 : i32
    %c0_i32_0 = arith.constant 0 : i32
    return %arg0, %c0_i32 : i32, i32
  }
  func.func @transform_1(%arg0: i32) -> (i32, i32) {
    %c0_i32 = arith.constant 0 : i32
    %c0_i32_0 = arith.constant 0 : i32
    return %arg0, %c0_i32 : i32, i32
  }
}

</mosaic_0001>

<bundles_post_ra>
// kernel: tpu_custom_call.1
= control target key start
LH: loop header
LB: loop body
LE: loop exit
PB: predicated region body
PF: predicated region fallthrough
CT: control target
= control target key end

     0   :  { %6 = vsyncpa [#allocation3], 0  ;;  %s305_s0 = inlined_call_operand.hbm [shape: f32[16,256], index: 0, kind: input, shape index: {}]   ;;  %s306_s1 = inlined_call_operand.hbm [shape: f32[16,256], index: 1, kind: output, shape index: {}]  }
   0x1   :  { %7 = vsyncpa [#allocation4], 0  ;;  %s250_s6 = smov [#allocation2]  }
   0x2   :  { %s13_s7 = sshll.u32 %s250_s6, 4  ;;  %s14_s7 = int_to_ptr.vmem [resolvable:$true] %s13_s7 }
   0x3   :  { %s214_s8 = scalar_lea.vmem %s14_s7, 512  ;;  %p219_p1 = scmp.lt.s32.totalorder %s14_s7, %s14_s7 }
   0x4   :  { %p215_p0 = scmp.ne.s32.totalorder %s14_s7, %s214_s8  ;;  %p220_p2 = scmp.lt.s32.totalorder %s214_s8, %s214_s8 }
   0x6   :  { %p221_p3 = por %p220_p2, %p219_p1 }
   0x8   :  { %p222_p4 = pnand %p221_p3, %p215_p0 }
   0xa   :  { %225 = shalt.err (!%p222_p4)
}
   0xb   :  { %s251_s9 = smov 256   ;;  %s252_s10 = smov 16  }
   0xc   :  { %19 = dma.hbm_to_vmem [thread:$0]  %s305_s0, 512, %s14_s7, [#allocation3], %s251_s9, %s251_s9, %s252_s10  }
   0xd   :  { %246 = dma.done.wait [#allocation3], 512  }
   0xe   :  { %247 = vsyncadd [#allocation3], 4294966784  ;;  %v23_v0 = vld [vmem:[#allocation2] sm:$0xff]  ;;  %v24_v1 = vld [vmem:[#allocation2 + $0x8] sm:$0xff]  ;;  %s253_s13 = smov 64   ;;  %vm151_vm0 = vcmask 523264  }
   0xf   :  { %29 = vrot.lane.b32.xlu0 %v23_v0, %s253_s13  ;;  %83 = vrot.lane.b32.xlu1 %v24_v1, %s253_s13  ;;  %v25_v2 = vld [vmem:[#allocation2 + $0x10] sm:$0xff]  ;;  %v26_v3 = vld [vmem:[#allocation2 + $0x18] sm:$0xff]  ;;  %s254_s0 = smov [#allocation5]  }
  0x10   :  { %s165_s14 = sshll.u32 %s254_s0, 4  ;;  %s166_s14 = int_to_ptr.vmem [resolvable:$true] %s165_s14 }
  0x11   :  { %s226_s15 = scalar_lea.vmem %s166_s14, 512  ;;  %p231_p6 = scmp.lt.s32.totalorder %s166_s14, %s166_s14 }
  0x12   :  { %p227_p5 = scmp.ne.s32.totalorder %s166_s14, %s226_s15  ;;  %p232_p7 = scmp.lt.s32.totalorder %s226_s15, %s226_s15 }
  0x13   :  { %31 = vrot.lane.b32.xlu0 %v25_v2, %s253_s13  ;;  %85 = vrot.lane.b32.xlu1 %v26_v3, %s253_s13 }
  0x14   :  { %p233_p8 = por %p232_p7, %p231_p6 }
  0x16   :  { %p234_p9 = pnand %p233_p8, %p227_p5 }
  0x81   :  { %v30_v4 = vpop.permute.xlu0 %29  ;;  %v84_v5 = vpop.permute.xlu1 %83 }
  0x82   :  { %v35_v6 = vmax.f32 %v23_v0, %v30_v4  ;;  %v89_v7 = vmax.f32 %v24_v1, %v84_v5 }
  0x84   :  { %45 = vrot.lane.b32.xlu0 %v35_v6, %s253_s13  ;;  %v37_v28 = vsub.f32 %v23_v0, %v35_v6  ;;  %v91_v31 = vsub.f32 %v24_v1, %v89_v7 }
  0x85   :  { %v32_v8 = vpop.permute.xlu0 %31  ;;  %v86_v9 = vpop.permute.xlu1 %85 }
  0x86   :  { %v36_v10 = vmax.f32 %v25_v2, %v32_v8  ;;  %v90_v11 = vmax.f32 %v26_v3, %v86_v9  ;;  %v39_v29 = vmul.f32 1.442695, %v37_v28  ;;  %v93_v34 = vmul.f32 1.442695, %v91_v31 }
  0x88   :  { %99 = vrot.lane.b32.xlu0 %v89_v7, %s253_s13  ;;  %47 = vrot.lane.b32.xlu1 %v36_v10, %s253_s13  ;;  %v38_v30 = vsub.f32 %v25_v2, %v36_v10  ;;  %v92_v33 = vsub.f32 %v26_v3, %v90_v11 }
  0x8a   :  { %v41_v32 = vmul.f32 1.442695, %v38_v30  ;;  %v95_v35 = vmul.f32 1.442695, %v92_v33 }
  0x8c   :  { %101 = vrot.lane.b32.xlu1 %v90_v11, %s253_s13 }
  0xf6   :  { %v46_v12 = vpop.permute.xlu0 %45 }
  0xf7   :  { %v51_v13 = vsub.f32 %v23_v0, %v46_v12 }
  0xf9   :  { %v53_v14 = vmul.f32 1.442695, %v51_v13 }
  0xfa   :  { %v48_v15 = vpop.permute.xlu1 %47  ;;  %v100_v16 = vpop.permute.xlu0 %99 }
  0xfb   :  { %182 = vpow2.f32 %v53_v14  ;;  %v52_v17 = vsub.f32 %v25_v2, %v48_v15  ;;  %v105_v18 = vsub.f32 %v24_v1, %v100_v16 }
  0xfd   :  { %v55_v19 = vmul.f32 1.442695, %v52_v17  ;;  %v107_v20 = vmul.f32 1.442695, %v105_v18 }
  0xfe   :  { %v102_v21 = vpop.permute.xlu1 %101 }
  0xff   :  { %184 = vpow2.f32 %v55_v19  ;;  %v106_v22 = vsub.f32 %v26_v3, %v102_v21 }
 0x100   :  { %186 = vpow2.f32 %v107_v20 }
 0x101   :  { %v109_v23 = vmul.f32 1.442695, %v106_v22 }
 0x103   :  { %188 = vpow2.f32 %v109_v23 }
 0x104   :  { %190 = vpow2.f32 %v39_v29 }
 0x105   :  { %192 = vpow2.f32 %v41_v32 }
 0x106   :  { %194 = vpow2.f32 %v93_v34 }
 0x107   :  { %196 = vpow2.f32 %v95_v35 }
 0x108   :  { %v183_v24 = vpop.eup %182 }
 0x109   :  { %59 = vrot.lane.b32.xlu0 %v183_v24, %s253_s13 }
 0x10c   :  { %v185_v25 = vpop.eup %184 }
 0x10d   :  { %v187_v26 = vpop.eup %186  ;;  %61 = vrot.lane.b32.xlu1 %v185_v25, %s253_s13 }
 0x10e   :  { %113 = vrot.lane.b32.xlu0 %v187_v26, %s253_s13 }
 0x110   :  { %v282_v27 = vpop.eup %188 }
 0x111   :  { %115 = vrot.lane.b32.xlu1 %v282_v27, %s253_s13  ;;  %v191_v36 = vpop.eup %190 }
 0x112   :  { %v193_v39 = vpop.eup %192 }
 0x113   :  { %v195_v41 = vpop.eup %194 }
 0x114   :  { %v197_v45 = vpop.eup %196 }
 0x17b   :  { %v60_v37 = vpop.permute.xlu0 %59 }
 0x17c   :  { %v65_v38 = vadd.f32 %v191_v36, %v60_v37 }
 0x17e   :  { %198 = vrcp.f32 %v65_v38 }
 0x17f   :  { %v62_v40 = vpop.permute.xlu1 %61 }
 0x180   :  { %v66_v42 = vadd.f32 %v193_v39, %v62_v40  ;;  %v114_v43 = vpop.permute.xlu0 %113 }
 0x181   :  { %v119_v44 = vadd.f32 %v195_v41, %v114_v43 }
 0x182   :  { %200 = vrcp.f32 %v66_v42 }
 0x183   :  { %202 = vrcp.f32 %v119_v44  ;;  %v116_v46 = vpop.permute.xlu1 %115 }
 0x184   :  { %v120_v47 = vadd.f32 %v197_v45, %v116_v46 }
 0x186   :  { %204 = vrcp.f32 %v120_v47 }
 0x18b   :  { %v199_v48 = vpop.eup %198 }
 0x18c   :  { %73 = vrot.lane.b32.xlu0 %v199_v48, %s253_s13  ;;  %v69_v49 = vmul.f32 %v199_v48, %v191_v36 }
 0x18f   :  { %v201_v50 = vpop.eup %200 }
 0x190   :  { %v203_v51 = vpop.eup %202  ;;  %75 = vrot.lane.b32.xlu1 %v201_v50, %s253_s13  ;;  %v70_v52 = vmul.f32 %v201_v50, %v193_v39 }
 0x191   :  { %127 = vrot.lane.b32.xlu0 %v203_v51, %s253_s13  ;;  %v123_v54 = vmul.f32 %v203_v51, %v195_v41 }
 0x193   :  { %v205_v53 = vpop.eup %204 }
 0x194   :  { %129 = vrot.lane.b32.xlu1 %v205_v53, %s253_s13  ;;  %v124_v55 = vmul.f32 %v205_v53, %v197_v45 }
 0x195   :  { %137 = vrot.lane.b32.xlu0 %v123_v54, %s253_s13 }
 0x198   :  { %139 = vrot.lane.b32.xlu1 %v124_v55, %s253_s13 }
 0x1fe   :  { %v74_v56 = vpop.permute.xlu0 %73 }
 0x1ff   :  { %v79_v57 = vmul.f32 %v183_v24, %v74_v56 }
 0x201   :  { %145 = vrot.lane.b32.xlu0 %v79_v57, %s253_s13 }
 0x202   :  { %v76_v58 = vpop.permute.xlu1 %75 }
 0x203   :  { %v80_v59 = vmul.f32 %v185_v25, %v76_v58  ;;  %v128_v60 = vpop.permute.xlu0 %127 }
 0x204   :  { %v133_v2 = vmul.f32 %v187_v26, %v128_v60 }
 0x205   :  { %147 = vrot.lane.b32.xlu1 %v80_v59, %s253_s13 }
 0x206   :  { %v130_v61 = vpop.permute.xlu1 %129 }
 0x207   :  { %v138_v62 = vpop.permute.xlu0 %137  ;;  %v134_v5 = vmul.f32 %v282_v27, %v130_v61 }
 0x208   :  { %v152_v63 = vsel %vm151_vm0, %v69_v49, %v138_v62 }
 0x209   :  { %156 = vst [vmem:[#allocation5] sm:$0xff] %v152_v63 }
 0x20a   :  { %v140_v0 = vpop.permute.xlu1 %139 }
 0x20b   :  { %v153_v1 = vsel %vm151_vm0, %v70_v52, %v140_v0 }
 0x20c   :  { %158 = vst [vmem:[#allocation5 + $0x10] sm:$0xff] %v153_v1 }
 0x273   :  { %v146_v3 = vpop.permute.xlu0 %145 }
 0x274   :  { %v154_v4 = vsel %vm151_vm0, %v146_v3, %v133_v2 }
 0x275   :  { %157 = vst [vmem:[#allocation5 + $0x8] sm:$0xff] %v154_v4 }
 0x277   :  { %v148_v6 = vpop.permute.xlu1 %147 }
 0x278   :  { %v155_v7 = vsel %vm151_vm0, %v148_v6, %v134_v5 }
 0x279   :  { %159 = vst [vmem:[#allocation5 + $0x18] sm:$0xff] %v155_v7 }
 0x27a   :  { %237 = shalt.err (!%p234_p9)
}
 0x27b   :  { %171 = dma.vmem_to_hbm [thread:$0]  %s166_s14, 512, %s306_s1, [#allocation4], %s251_s9, %s251_s9, %s252_s10  }
 0x27c   :  { %248 = dma.done.wait [#allocation4], 512  }
 0x27d   :  { %249 = vsyncadd [#allocation4], 4294966784 }
 0x27e   :  { %175 = vsyncpa [#allocation3], 1 }
 0x27f   :  { %176 = vsyncpa [#allocation4], 1 }

</bundles_post_ra>
